<compile_context>
chip_gen: v5e
topology: v5e:2x2
jax: 0.10.0
libtpu: 0.0.40
codegen_flags: <defaults>
</compile_context>

<pallas_src>
import functools
import math

import jax
import jax.numpy as jnp
from jax.experimental import pallas as pl
from jax.experimental.pallas import tpu as pltpu

EPS = 1e-5  # torch.nn.LayerNorm default


def _round_up(x, m):
    return (x + m - 1) // m * m


def _prenorm_linear_kernel(x_ref, w_ref, b_ref, o_ref, xn_ref, *, d_true, d_pad):
    # x_ref : (tm, Dp)   input rows (zero-padded rows / feature columns)
    # w_ref : (Dp, tn)   folded weight  diag(gamma) @ W^T  (zero padded rows)
    # b_ref : (1,  tn)   folded bias    beta @ W^T + b     (f32)
    # o_ref : (tm, tn)   output tile
    # xn_ref: (tm, Dp)   VMEM scratch: normalized rows, computed once per row
    #                    tile (j == 0) and reused for every column tile j.
    j = pl.program_id(1)

    @pl.when(j == 0)
    def _():
        x = x_ref[...].astype(jnp.float32)
        inv_d = 1.0 / d_true
        mean = jnp.sum(x, axis=-1, keepdims=True) * inv_d
        xc = x - mean
        # Padded feature columns are zero, so each contributes exactly mean^2
        # to sum(xc^2); subtract that to recover the true biased variance.
        ssq = jnp.sum(xc * xc, axis=-1, keepdims=True)
        var = (ssq - (d_pad - d_true) * (mean * mean)) * inv_d
        inv = jax.lax.rsqrt(var + EPS)
        xn_ref[...] = (xc * inv).astype(xn_ref.dtype)

    # fn = Linear: normalized rows @ folded weight, f32 accumulation on MXU.
    # Padded xn columns hit zero weight rows, so they do not contribute.
    acc = jnp.dot(xn_ref[...], w_ref[...], preferred_element_type=jnp.float32)
    o_ref[...] = (acc + b_ref[...]).astype(o_ref.dtype)


def prenorm_linear(x, gamma, beta, w, wb, *, tm=512, tn=512, dot_dtype=None):
    """PreNorm with fn = Linear.

    x: [..., D]; gamma/beta: [D]; w: [Dout, D] (torch layout); wb: [Dout].
    dot_dtype: dtype of the MXU operands (default x.dtype; pass jnp.bfloat16
               for bf16 operands with f32 accumulation).
    """
    *lead, D = x.shape
    Dout = w.shape[0]
    M = math.prod(lead) if lead else 1
    if dot_dtype is None:
        dot_dtype = x.dtype

    # ---- host-side prep: fold the LayerNorm affine into the Linear ---------
    g32 = gamma.astype(jnp.float32)
    w32 = w.astype(jnp.float32)
    w_fold = g32[:, None] * w32.T                                   # [D, Dout]
    b_fold = beta.astype(jnp.float32) @ w32.T + wb.astype(jnp.float32)  # [Dout]

    # ---- pad to lane/sublane-friendly shapes --------------------------------
    Dp = _round_up(D, 128)
    Doutp = _round_up(Dout, 128)
    tm_eff = min(tm, _round_up(M, 8))
    tn_eff = min(tn, Doutp)
    Mp = _round_up(M, tm_eff)
    num_i = Mp // tm_eff
    num_j = Doutp // tn_eff

    x2 = jnp.pad(x.reshape(M, D), ((0, Mp - M), (0, Dp - D)))
    wk = jnp.pad(w_fold, ((0, Dp - D), (0, Doutp - Dout))).astype(dot_dtype)
    bk = jnp.pad(b_fold, (0, Doutp - Dout)).reshape(1, Doutp)

    kernel = functools.partial(_prenorm_linear_kernel, d_true=D, d_pad=Dp)

    def build(single_buffer_consts):
        def const_spec(shape, index_map):
            # Grid-invariant operand: request a single VMEM buffer.
            if single_buffer_consts and hasattr(pl, "Buffered"):
                try:
                    return pl.BlockSpec(shape, index_map,
                                        pipeline_mode=pl.Buffered(1))
                except TypeError:  # BlockSpec without pipeline_mode support
                    pass
            return pl.BlockSpec(shape, index_map)

        return pl.pallas_call(
            kernel,
            out_shape=jax.ShapeDtypeStruct((Mp, Doutp), x.dtype),
            grid_spec=pltpu.PrefetchScalarGridSpec(
                num_scalar_prefetch=0,
                grid=(num_i, num_j),
                in_specs=[
                    pl.BlockSpec((tm_eff, Dp), lambda i, j: (i, 0)),
                    const_spec((Dp, tn_eff), lambda i, j: (0, j)),
                    const_spec((1, tn_eff), lambda i, j: (0, j)),
                ],
                out_specs=pl.BlockSpec((tm_eff, tn_eff), lambda i, j: (i, j)),
                scratch_shapes=[pltpu.VMEM((tm_eff, Dp), dot_dtype)],
            ),
            compiler_params=pltpu.CompilerParams(
                dimension_semantics=("parallel", "arbitrary"),
                vmem_limit_bytes=64 * 1024 * 1024,
            ),
        )

    if num_j == 1:
        # Weight / bias blocks are grid-invariant here: try single-buffering.
        try:
            out = build(True)(x2, wk, bk)
        except Exception:  # pipeline_mode / Buffered(1) rejected -> fall back
            out = build(False)(x2, wk, bk)
    else:
        out = build(False)(x2, wk, bk)

    return out[:M, :Dout].reshape(*lead, Dout)


def _reference(x, gamma, beta, w, wb):
    xf = x.astype(jnp.float32)
    mean = jnp.mean(xf, axis=-1, keepdims=True)
    var = jnp.mean((xf - mean) ** 2, axis=-1, keepdims=True)
    y = (xf - mean) * jax.lax.rsqrt(var + EPS) * gamma.astype(jnp.float32) \
        + beta.astype(jnp.float32)
    out = y @ w.T.astype(jnp.float32) + wb.astype(jnp.float32)
    return out.astype(x.dtype)


if __name__ == "__main__":
    B, S, D = 2, 8, 32          # PreNorm(dim=32), fn = Linear(32, 32)
    key = jax.random.PRNGKey(0)
    kx, kg, kb, kw, kwb = jax.random.split(key, 5)

    x = jax.random.normal(kx, (B, S, D), dtype=jnp.float32)
    # LayerNorm params (deterministic, perturbed from identity init).
    gamma = 1.0 + 0.1 * jax.random.normal(kg, (D,), dtype=jnp.float32)
    beta = 0.1 * jax.random.normal(kb, (D,), dtype=jnp.float32)
    # fn = Linear(dim, dim) params, torch layout [out, in].
    w = jax.random.normal(kw, (D, D), dtype=jnp.float32) * (1.0 / jnp.sqrt(D))
    wb = 0.1 * jax.random.normal(kwb, (D,), dtype=jnp.float32)

    out = prenorm_linear(x, gamma, beta, w, wb)
    out = jax.block_until_ready(out)

    ref = _reference(x, gamma, beta, w, wb)
    assert out.shape == (B, S, D)
    # Tolerance covers the affine-fold reassociation and possible MXU
    # default-precision operand rounding; real normalization/fold bugs are
    # orders of magnitude larger than this.
    assert jnp.allclose(out, ref, atol=1e-2, rtol=1e-2), float(
        jnp.max(jnp.abs(out - ref)))
    print("KERNEL_OK")
</pallas_src>

<mosaic_0001>
module attributes {stable_mosaic.version = 11 : i64} {
  func.func @_prenorm_linear_kernel(%arg0: i32, %arg1: i32, %arg2: memref<16x128xf32, #tpu.memory_space<vmem>>, %arg3: memref<128x128xf32, #tpu.memory_space<vmem>>, %arg4: memref<1x128xf32, #tpu.memory_space<vmem>>, %arg5: memref<16x128xf32, #tpu.memory_space<vmem>>, %arg6: memref<16x128xf32, #tpu.memory_space<vmem>>) attributes {dimension_semantics = [#tpu.dimension_semantics<parallel>, #tpu.dimension_semantics<arbitrary>], iteration_bounds = array<i64: 1, 1>, scalar_prefetch = 0 : i64, scratch_operands = 1 : i64, tpu.core_type = #tpu.core_type<tc>, window_params = [{transform_indices = @transform_0, window_bounds = array<i64: 16, 128>}, {pipeline_mode = #tpu.pipeline_mode<synchronous>, transform_indices = @transform_1, window_bounds = array<i64: 128, 128>}, {pipeline_mode = #tpu.pipeline_mode<synchronous>, transform_indices = @transform_2, window_bounds = array<i64: 1, 128>}, {transform_indices = @transform_3, window_bounds = array<i64: 16, 128>}]} {
    %c0_i32 = arith.constant 0 : i32
    %0 = arith.cmpi eq, %arg1, %c0_i32 : i32
    %1 = arith.extui %0 : i1 to i32
    %c0_i32_0 = arith.constant 0 : i32
    %2 = arith.cmpi ne, %1, %c0_i32_0 : i32
    scf.if %2 {
      %c0_8 = arith.constant 0 : index
      %c0_9 = arith.constant 0 : index
      %10 = vector.load %arg2[%c0_8, %c0_9] : memref<16x128xf32, #tpu.memory_space<vmem>>, vector<16x128xf32>
      %cst_10 = arith.constant dense<0.000000e+00> : vector<16xf32>
      %11 = vector.multi_reduction <add>, %10, %cst_10 [1] : vector<16x128xf32> to vector<16xf32>
      %12 = vector.shape_cast %11 : vector<16xf32> to vector<16x1xf32>
      %cst_11 = arith.constant 3.125000e-02 : f32
      %13 = vector.broadcast %cst_11 : f32 to vector<16x1xf32>
      %14 = arith.mulf %12, %13 : vector<16x1xf32>
      %15 = vector.broadcast %14 : vector<16x1xf32> to vector<16x128xf32>
      %16 = arith.subf %10, %15 : vector<16x128xf32>
      %17 = arith.mulf %16, %16 : vector<16x128xf32>
      %cst_12 = arith.constant dense<0.000000e+00> : vector<16xf32>
      %18 = vector.multi_reduction <add>, %17, %cst_12 [1] : vector<16x128xf32> to vector<16xf32>
      %19 = vector.shape_cast %18 : vector<16xf32> to vector<16x1xf32>
      %20 = arith.mulf %14, %14 : vector<16x1xf32>
      %cst_13 = arith.constant 9.600000e+01 : f32
      %21 = vector.broadcast %cst_13 : f32 to vector<16x1xf32>
      %22 = arith.mulf %21, %20 : vector<16x1xf32>
      %23 = arith.subf %19, %22 : vector<16x1xf32>
      %cst_14 = arith.constant 3.125000e-02 : f32
      %24 = vector.broadcast %cst_14 : f32 to vector<16x1xf32>
      %25 = arith.mulf %23, %24 : vector<16x1xf32>
      %cst_15 = arith.constant 9.99999974E-6 : f32
      %26 = vector.broadcast %cst_15 : f32 to vector<16x1xf32>
      %27 = arith.addf %25, %26 : vector<16x1xf32>
      %28 = math.rsqrt %27 : vector<16x1xf32>
      %29 = vector.broadcast %28 : vector<16x1xf32> to vector<16x128xf32>
      %30 = arith.mulf %16, %29 : vector<16x128xf32>
      %c0_16 = arith.constant 0 : index
      %c0_17 = arith.constant 0 : index
      %31 = vector.load %arg6[%c0_16, %c0_17] : memref<16x128xf32, #tpu.memory_space<vmem>>, vector<16x128xf32>
      tpu.vector_store %arg6[%c0_16, %c0_17], %30 {strides = array<i32>} : memref<16x128xf32, #tpu.memory_space<vmem>>, vector<16x128xf32>,
    } else {
    }
    %c0 = arith.constant 0 : index
    %c0_1 = arith.constant 0 : index
    %3 = vector.load %arg6[%c0, %c0_1] : memref<16x128xf32, #tpu.memory_space<vmem>>, vector<16x128xf32>
    %c0_2 = arith.constant 0 : index
    %c0_3 = arith.constant 0 : index
    %4 = vector.load %arg3[%c0_2, %c0_3] : memref<128x128xf32, #tpu.memory_space<vmem>>, vector<128x128xf32>
    %cst = arith.constant dense<0.000000e+00> : vector<16x128xf32>
    %5 = tpu.matmul %3, %4, %cst {dimension_numbers = #tpu.dot_dimension_numbers<[1], [0], [0], [1], [0, 0, 1, 1], [], []>} : vector<16x128xf32>, vector<128x128xf32>, vector<16x128xf32> -> vector<16x128xf32>
    %c0_4 = arith.constant 0 : index
    %c0_5 = arith.constant 0 : index
    %6 = vector.load %arg4[%c0_4, %c0_5] : memref<1x128xf32, #tpu.memory_space<vmem>>, vector<1x128xf32>
    %7 = vector.broadcast %6 : vector<1x128xf32> to vector<16x128xf32>
    %8 = arith.addf %5, %7 : vector<16x128xf32>
    %c0_6 = arith.constant 0 : index
    %c0_7 = arith.constant 0 : index
    %9 = vector.load %arg5[%c0_6, %c0_7] : memref<16x128xf32, #tpu.memory_space<vmem>>, vector<16x128xf32>
    tpu.vector_store %arg5[%c0_6, %c0_7], %8 {strides = array<i32>} : memref<16x128xf32, #tpu.memory_space<vmem>>, vector<16x128xf32>,
    return
  }
  func.func @transform_0(%arg0: i32, %arg1: i32) -> (i32, i32) {
    %c0_i32 = arith.constant 0 : i32
    %c0_i32_0 = arith.constant 0 : i32
    return %arg0, %c0_i32 : i32, i32
  }
  func.func @transform_1(%arg0: i32, %arg1: i32) -> (i32, i32) {
    %c0_i32 = arith.constant 0 : i32
    %c0_i32_0 = arith.constant 0 : i32
    return %c0_i32, %arg1 : i32, i32
  }
  func.func @transform_2(%arg0: i32, %arg1: i32) -> (i32, i32) {
    %c0_i32 = arith.constant 0 : i32
    %c0_i32_0 = arith.constant 0 : i32
    return %c0_i32, %arg1 : i32, i32
  }
  func.func @transform_3(%arg0: i32, %arg1: i32) -> (i32, i32) {
    %c0_i32 = arith.constant 0 : i32
    return %arg0, %arg1 : i32, i32
  }
}

module attributes {stable_mosaic.version = 11 : i64} {
  func.func @_prenorm_linear_kernel(%arg0: i32, %arg1: i32, %arg2: memref<16x128xf32, #tpu.memory_space<vmem>>, %arg3: memref<128x128xf32, #tpu.memory_space<vmem>>, %arg4: memref<1x128xf32, #tpu.memory_space<vmem>>, %arg5: memref<16x128xf32, #tpu.memory_space<vmem>>, %arg6: memref<16x128xf32, #tpu.memory_space<vmem>>) attributes {dimension_semantics = [#tpu.dimension_semantics<parallel>, #tpu.dimension_semantics<arbitrary>], iteration_bounds = array<i64: 1, 1>, scalar_prefetch = 0 : i64, scratch_operands = 1 : i64, tpu.core_type = #tpu.core_type<tc>, window_params = [{transform_indices = @transform_0, window_bounds = array<i64: 16, 128>}, {transform_indices = @transform_1, window_bounds = array<i64: 128, 128>}, {transform_indices = @transform_2, window_bounds = array<i64: 1, 128>}, {transform_indices = @transform_3, window_bounds = array<i64: 16, 128>}]} {
    %c0_i32 = arith.constant 0 : i32
    %0 = arith.cmpi eq, %arg1, %c0_i32 : i32
    %1 = arith.extui %0 : i1 to i32
    %c0_i32_0 = arith.constant 0 : i32
    %2 = arith.cmpi ne, %1, %c0_i32_0 : i32
    scf.if %2 {
      %c0_8 = arith.constant 0 : index
      %c0_9 = arith.constant 0 : index
      %10 = vector.load %arg2[%c0_8, %c0_9] : memref<16x128xf32, #tpu.memory_space<vmem>>, vector<16x128xf32>
      %cst_10 = arith.constant dense<0.000000e+00> : vector<16xf32>
      %11 = vector.multi_reduction <add>, %10, %cst_10 [1] : vector<16x128xf32> to vector<16xf32>
      %12 = vector.shape_cast %11 : vector<16xf32> to vector<16x1xf32>
      %cst_11 = arith.constant 3.125000e-02 : f32
      %13 = vector.broadcast %cst_11 : f32 to vector<16x1xf32>
      %14 = arith.mulf %12, %13 : vector<16x1xf32>
      %15 = vector.broadcast %14 : vector<16x1xf32> to vector<16x128xf32>
      %16 = arith.subf %10, %15 : vector<16x128xf32>
      %17 = arith.mulf %16, %16 : vector<16x128xf32>
      %cst_12 = arith.constant dense<0.000000e+00> : vector<16xf32>
      %18 = vector.multi_reduction <add>, %17, %cst_12 [1] : vector<16x128xf32> to vector<16xf32>
      %19 = vector.shape_cast %18 : vector<16xf32> to vector<16x1xf32>
      %20 = arith.mulf %14, %14 : vector<16x1xf32>
      %cst_13 = arith.constant 9.600000e+01 : f32
      %21 = vector.broadcast %cst_13 : f32 to vector<16x1xf32>
      %22 = arith.mulf %21, %20 : vector<16x1xf32>
      %23 = arith.subf %19, %22 : vector<16x1xf32>
      %cst_14 = arith.constant 3.125000e-02 : f32
      %24 = vector.broadcast %cst_14 : f32 to vector<16x1xf32>
      %25 = arith.mulf %23, %24 : vector<16x1xf32>
      %cst_15 = arith.constant 9.99999974E-6 : f32
      %26 = vector.broadcast %cst_15 : f32 to vector<16x1xf32>
      %27 = arith.addf %25, %26 : vector<16x1xf32>
      %28 = math.rsqrt %27 : vector<16x1xf32>
      %29 = vector.broadcast %28 : vector<16x1xf32> to vector<16x128xf32>
      %30 = arith.mulf %16, %29 : vector<16x128xf32>
      %c0_16 = arith.constant 0 : index
      %c0_17 = arith.constant 0 : index
      %31 = vector.load %arg6[%c0_16, %c0_17] : memref<16x128xf32, #tpu.memory_space<vmem>>, vector<16x128xf32>
      tpu.vector_store %arg6[%c0_16, %c0_17], %30 {strides = array<i32>} : memref<16x128xf32, #tpu.memory_space<vmem>>, vector<16x128xf32>,
    } else {
    }
    %c0 = arith.constant 0 : index
    %c0_1 = arith.constant 0 : index
    %3 = vector.load %arg6[%c0, %c0_1] : memref<16x128xf32, #tpu.memory_space<vmem>>, vector<16x128xf32>
    %c0_2 = arith.constant 0 : index
    %c0_3 = arith.constant 0 : index
    %4 = vector.load %arg3[%c0_2, %c0_3] : memref<128x128xf32, #tpu.memory_space<vmem>>, vector<128x128xf32>
    %cst = arith.constant dense<0.000000e+00> : vector<16x128xf32>
    %5 = tpu.matmul %3, %4, %cst {dimension_numbers = #tpu.dot_dimension_numbers<[1], [0], [0], [1], [0, 0, 1, 1], [], []>} : vector<16x128xf32>, vector<128x128xf32>, vector<16x128xf32> -> vector<16x128xf32>
    %c0_4 = arith.constant 0 : index
    %c0_5 = arith.constant 0 : index
    %6 = vector.load %arg4[%c0_4, %c0_5] : memref<1x128xf32, #tpu.memory_space<vmem>>, vector<1x128xf32>
    %7 = vector.broadcast %6 : vector<1x128xf32> to vector<16x128xf32>
    %8 = arith.addf %5, %7 : vector<16x128xf32>
    %c0_6 = arith.constant 0 : index
    %c0_7 = arith.constant 0 : index
    %9 = vector.load %arg5[%c0_6, %c0_7] : memref<16x128xf32, #tpu.memory_space<vmem>>, vector<16x128xf32>
    tpu.vector_store %arg5[%c0_6, %c0_7], %8 {strides = array<i32>} : memref<16x128xf32, #tpu.memory_space<vmem>>, vector<16x128xf32>,
    return
  }
  func.func @transform_0(%arg0: i32, %arg1: i32) -> (i32, i32) {
    %c0_i32 = arith.constant 0 : i32
    %c0_i32_0 = arith.constant 0 : i32
    return %arg0, %c0_i32 : i32, i32
  }
  func.func @transform_1(%arg0: i32, %arg1: i32) -> (i32, i32) {
    %c0_i32 = arith.constant 0 : i32
    %c0_i32_0 = arith.constant 0 : i32
    return %c0_i32, %arg1 : i32, i32
  }
  func.func @transform_2(%arg0: i32, %arg1: i32) -> (i32, i32) {
    %c0_i32 = arith.constant 0 : i32
    %c0_i32_0 = arith.constant 0 : i32
    return %c0_i32, %arg1 : i32, i32
  }
  func.func @transform_3(%arg0: i32, %arg1: i32) -> (i32, i32) {
    %c0_i32 = arith.constant 0 : i32
    return %arg0, %arg1 : i32, i32
  }
}

</mosaic_0001>

<bundles_post_ra>
// kernel: tpu_custom_call.1
= control target key start
LH: loop header
LB: loop body
LE: loop exit
PB: predicated region body
PF: predicated region fallthrough
CT: control target
= control target key end

     0   :  { %8 = vsyncpa [#allocation4], 0  ;;  %s328_s0 = inlined_call_operand.hbm [shape: f32[16,128], index: 0, kind: input, shape index: {}]   ;;  %s329_s1 = inlined_call_operand.hbm [shape: f32[128,128], index: 1, kind: input, shape index: {}]   ;;  %s330_s2 = inlined_call_operand.vmem [shape: f32[1,128], index: 2, kind: input, shape index: {}]   ;;  %s331_s3 = inlined_call_operand.hbm [shape: f32[16,128], index: 3, kind: output, shape index: {}]  }
   0x1   :  { %9 = vsyncpa [#allocation7], 0 }
   0x2   :  { %10 = vsyncpa [#allocation5], 0  ;;  %s15_s14 = sshll.u32 %s328_s0, 4  ;;  %s272_s15 = smov [#allocation3]   ;;  %s16_s14 = int_to_ptr.hbm [resolvable:$true] %s15_s14 }
   0x3   :  { %s17_s16 = sshll.u32 %s272_s15, 4  ;;  %s28_s19 = sshll.u32 %s329_s1, 4  ;;  %s18_s16 = int_to_ptr.vmem [resolvable:$true] %s17_s16  ;;  %s29_s19 = int_to_ptr.hbm [resolvable:$true] %s28_s19 }
   0x4   :  { %s273_s20 = smov 128   ;;  %s274_s21 = smov 8  }
   0x5   :  { %23 = dma.hbm_to_vmem [thread:$0]  %s16_s14, 256, %s18_s16, [#allocation4], %s273_s20, %s273_s20, %s274_s21  }
   0x6   :  { %s275_s22 = smov [#allocation6]  }
   0x7   :  { %s30_s23 = sshll.u32 %s275_s22, 4  ;;  %s31_s23 = int_to_ptr.vmem [resolvable:$true] %s30_s23 }
   0x8   :  { %36 = dma.hbm_to_vmem [thread:$0]  %s29_s19, 2048, %s31_s23, [#allocation7], %s273_s20, %s273_s20, %s274_s21  }
   0x9   :  { %266 = dma.done.wait [#allocation4], 256  }
   0xa   :  { %267 = vsyncadd [#allocation4], 4294967040 }
   0xb   :  { %268 = dma.done.wait [#allocation7], 2048  }
   0xc   :  { %269 = vsyncadd [#allocation7], 4294965248  ;;  %v51_v0 = vld [vmem:[#allocation3] sm:$0xff]  ;;  %v52_v1 = vld [vmem:[#allocation3 + $0x8] sm:$0xff]  ;;  %s276_s24 = smov [#allocation8]   ;;  %s154_s28 = sshll.u32 %s331_s3, 4  ;;  %s155_s28 = int_to_ptr.hbm [resolvable:$true] %s154_s28 }
   0xd   :  { %53 = vadd.xlane.f32.xlu0 %v51_v0  ;;  %v118_v2 = vld [vmem:[#allocation6 + $0x78] sm:$0xff]  ;;  %v117_v3 = vld [vmem:[#allocation6 + $0x70] sm:$0xff]  ;;  %v116_v4 = vld [vmem:[#allocation6 + $0x68] sm:$0xff]  ;;  %s152_s25 = sshll.u32 %s276_s24, 4  ;;  %s153_s25 = int_to_ptr.vmem [resolvable:$true] %s152_s25 }
   0xe   :  { %123 = vmatpush.msra.mxu0 %v118_v2  ;;  %168 = vmatpush.msra.mxu1 %v118_v2  ;;  %v115_v13 = vld [vmem:[#allocation6 + $0x60] sm:$0xff]  ;;  %v114_v14 = vld [vmem:[#allocation6 + $0x58] sm:$0xff]  ;;  %v113_v15 = vld [vmem:[#allocation6 + $0x50] sm:$0xff] }
   0xf   :  { %v112_v16 = vld [vmem:[#allocation6 + $0x48] sm:$0xff]  ;;  %v111_v17 = vld [vmem:[#allocation6 + $0x40] sm:$0xff]  ;;  %v110_v18 = vld [vmem:[#allocation6 + $0x38] sm:$0xff] }
  0x10   :  { %124 = vmatpush.msra.mxu0 %v117_v3  ;;  %169 = vmatpush.msra.mxu1 %v117_v3  ;;  %v109_v19 = vld [vmem:[#allocation6 + $0x30] sm:$0xff]  ;;  %v108_v20 = vld [vmem:[#allocation6 + $0x28] sm:$0xff]  ;;  %v107_v21 = vld [vmem:[#allocation6 + $0x20] sm:$0xff] }
  0x11   :  { %v106_v22 = vld [vmem:[#allocation6 + $0x18] sm:$0xff]  ;;  %v105_v23 = vld [vmem:[#allocation6 + $0x10] sm:$0xff]  ;;  %v104_v24 = vld [vmem:[#allocation6 + $0x8] sm:$0xff] }
  0x12   :  { %125 = vmatpush.msra.mxu0 %v116_v4  ;;  %170 = vmatpush.msra.mxu1 %v116_v4  ;;  %v103_v25 = vld [vmem:[#allocation6] sm:$0xff]  ;;  %v189_v54 = vld [vmem:[%s330_s2] ss:$0 sm:$0xff] }
  0x14   :  { %126 = vmatpush.msra.mxu0 %v115_v13  ;;  %171 = vmatpush.msra.mxu1 %v115_v13 }
  0x15   :  { %55 = vadd.xlane.f32.xlu0 %v52_v1 }
  0x16   :  { %127 = vmatpush.msra.mxu0 %v114_v14  ;;  %172 = vmatpush.msra.mxu1 %v114_v14 }
  0x18   :  { %128 = vmatpush.msra.mxu0 %v113_v15  ;;  %173 = vmatpush.msra.mxu1 %v113_v15 }
  0x1a   :  { %129 = vmatpush.msra.mxu0 %v112_v16  ;;  %174 = vmatpush.msra.mxu1 %v112_v16 }
  0x1c   :  { %130 = vmatpush.msra.mxu0 %v111_v17  ;;  %175 = vmatpush.msra.mxu1 %v111_v17 }
  0x1e   :  { %131 = vmatpush.msra.mxu0 %v110_v18  ;;  %176 = vmatpush.msra.mxu1 %v110_v18 }
  0x20   :  { %132 = vmatpush.msra.mxu0 %v109_v19  ;;  %177 = vmatpush.msra.mxu1 %v109_v19 }
  0x22   :  { %133 = vmatpush.msra.mxu0 %v108_v20  ;;  %178 = vmatpush.msra.mxu1 %v108_v20 }
  0x24   :  { %134 = vmatpush.msra.mxu0 %v107_v21  ;;  %179 = vmatpush.msra.mxu1 %v107_v21 }
  0x26   :  { %135 = vmatpush.msra.mxu0 %v106_v22  ;;  %180 = vmatpush.msra.mxu1 %v106_v22 }
  0x28   :  { %136 = vmatpush.msra.mxu0 %v105_v23  ;;  %181 = vmatpush.msra.mxu1 %v105_v23 }
  0x2a   :  { %137 = vmatpush.msra.mxu0 %v104_v24  ;;  %182 = vmatpush.msra.mxu1 %v104_v24 }
  0x2c   :  { %138 = vmatpush.msra.mxu0 %v103_v25  ;;  %183 = vmatpush.msra.mxu1 %v103_v25 }
  0x80   :  { %v54_v5 = vpop.xlane.xlu0 %53 }
  0x81   :  { %v57_v6 = vmul.f32 0.03125, %v54_v5 }
  0x83   :  { %v309_v7 = vsub.f32 %v51_v0, %v57_v6  ;;  %v67_v26 = vmul.f32 %v57_v6, %v57_v6 }
  0x85   :  { %v61_v8 = vmul.f32 %v309_v7, %v309_v7  ;;  %v69_v27 = vmul.f32 96.0, %v67_v26 }
  0x87   :  { %63 = vadd.xlane.f32.xlu1 %v61_v8 }
  0x88   :  { %v56_v9 = vpop.xlane.xlu0 %55 }
  0x89   :  { %v58_v10 = vmul.f32 0.03125, %v56_v9 }
  0x8b   :  { %v313_v11 = vsub.f32 %v52_v1, %v58_v10  ;;  %v68_v30 = vmul.f32 %v58_v10, %v58_v10 }
  0x8d   :  { %v62_v12 = vmul.f32 %v313_v11, %v313_v11  ;;  %v70_v33 = vmul.f32 96.0, %v68_v30 }
  0x8f   :  { %65 = vadd.xlane.f32.xlu1 %v62_v12 }
  0xfa   :  { %v64_v28 = vpop.xlane.xlu1 %63 }
  0xfb   :  { %v71_v29 = vsub.f32 %v64_v28, %v69_v27 }
  0xfd   :  { %v73_v31 = vmul.f32 0.03125, %v71_v29 }
  0xff   :  { %v75_v32 = vadd.f32 1e-05, %v73_v31 }
 0x101   :  { %190 = vrsqrt.f32 %v75_v32  ;;  %vm83_vm1 = vweird.f32 %v75_v32 }
 0x102   :  { %v66_v34 = vpop.xlane.xlu1 %65 }
 0x103   :  { %v72_v35 = vsub.f32 %v66_v34, %v70_v33 }
 0x105   :  { %v74_v36 = vmul.f32 0.03125, %v72_v35 }
 0x107   :  { %v191_v37 = vpop.eup %190  ;;  %v76_v38 = vadd.f32 1e-05, %v74_v36 }
 0x108   :  { %v78_v39 = vmul.f32 %v191_v37, %v75_v32  ;;  %vm84_vm0 = vweird.f32 %v191_v37 }
 0x109   :  { %192 = vrsqrt.f32 %v76_v38  ;;  %vm85_vm2 = vmor %vm83_vm1, %vm84_vm0  ;;  %vm93_vm4 = vweird.f32 %v76_v38 }
 0x10a   :  { %v79_v40 = vmul.f32 %v191_v37, %v78_v39 }
 0x10c   :  { %v80_v41 = vmul.f32 0.5, %v79_v40 }
 0x10e   :  { %v81_v42 = vsub.f32 1.5, %v80_v41 }
 0x10f   :  { %v193_v43 = vpop.eup %192 }
 0x110   :  { %v88_v44 = vmul.f32 %v193_v43, %v76_v38  ;;  %v82_v45 = vmul.f32 %v191_v37, %v81_v42  ;;  %vm94_vm3 = vweird.f32 %v193_v43 }
 0x111   :  { %vm95_vm5 = vmor %vm93_vm4, %vm94_vm3 }
 0x112   :  { %v89_v46 = vmul.f32 %v193_v43, %v88_v44  ;;  %v86_v47 = vsel %vm85_vm2, %v191_v37, %v82_v45 }
 0x113   :  { %v97_v48 = vmul.f32 %v86_v47, %v309_v7 }
 0x114   :  { %v90_v49 = vmul.f32 0.5, %v89_v46 }
 0x115   :  { %139 = vmatmul.f32.vlgmr.msra.gmra.mxu0 %v97_v48 }
 0x116   :  { %v91_v50 = vsub.f32 1.5, %v90_v49 }
 0x118   :  { %v92_v51 = vmul.f32 %v193_v43, %v91_v50 }
 0x11a   :  { %v96_v52 = vsel %vm95_vm5, %v193_v43, %v92_v51 }
 0x11b   :  { %v98_v53 = vmul.f32 %v96_v52, %v313_v11 }
 0x11d   :  { %142 = vmatmul.f32.vlgmr.msra.gmra.mxu1 %v98_v53 }
 0x192   :  { %v140_v55 = vpop.f32.mrf.mxu0 }
 0x193   :  { %v141_v56 = vadd.f32 %v189_v54, %v140_v55 }
 0x195   :  { %146 = vst [vmem:[#allocation8] sm:$0xff] %v141_v56 }
 0x19a   :  { %v143_v57 = vpop.f32.mrf.mxu1 }
 0x19b   :  { %v144_v58 = vadd.f32 %v189_v54, %v143_v57 }
 0x19d   :  { %147 = vst [vmem:[#allocation8 + $0x8] sm:$0xff] %v144_v58 }
 0x19e   :  { %160 = dma.vmem_to_hbm [thread:$0]  %s153_s25, 256, %s155_s28, [#allocation5], %s273_s20, %s273_s20, %s274_s21  }
 0x19f   :  { %270 = dma.done.wait [#allocation5], 256  }
 0x1a0   :  { %271 = vsyncadd [#allocation5], 4294967040 }
 0x1a1   :  { %165 = vsyncpa [#allocation4], 1 }
 0x1a2   :  { %166 = vsyncpa [#allocation7], 1 }
 0x1a3   :  { %167 = vsyncpa [#allocation5], 1 }

// kernel: tpu_custom_call.1
= control target key start
LH: loop header
LB: loop body
LE: loop exit
PB: predicated region body
PF: predicated region fallthrough
CT: control target
= control target key end

     0   :  { %8 = vsyncpa [#allocation4], 0  ;;  %s328_s0 = inlined_call_operand.hbm [shape: f32[16,128], index: 0, kind: input, shape index: {}]   ;;  %s329_s1 = inlined_call_operand.hbm [shape: f32[128,128], index: 1, kind: input, shape index: {}]   ;;  %s330_s2 = inlined_call_operand.vmem [shape: f32[1,128], index: 2, kind: input, shape index: {}]   ;;  %s331_s3 = inlined_call_operand.hbm [shape: f32[16,128], index: 3, kind: output, shape index: {}]  }
   0x1   :  { %9 = vsyncpa [#allocation7], 0 }
   0x2   :  { %10 = vsyncpa [#allocation5], 0  ;;  %s15_s14 = sshll.u32 %s328_s0, 4  ;;  %s272_s15 = smov [#allocation3]   ;;  %s16_s14 = int_to_ptr.hbm [resolvable:$true] %s15_s14 }
   0x3   :  { %s17_s16 = sshll.u32 %s272_s15, 4  ;;  %s28_s19 = sshll.u32 %s329_s1, 4  ;;  %s18_s16 = int_to_ptr.vmem [resolvable:$true] %s17_s16  ;;  %s29_s19 = int_to_ptr.hbm [resolvable:$true] %s28_s19 }
   0x4   :  { %s273_s20 = smov 128   ;;  %s274_s21 = smov 8  }
   0x5   :  { %23 = dma.hbm_to_vmem [thread:$0]  %s16_s14, 256, %s18_s16, [#allocation4], %s273_s20, %s273_s20, %s274_s21  }
   0x6   :  { %s275_s22 = smov [#allocation6]  }
   0x7   :  { %s30_s23 = sshll.u32 %s275_s22, 4  ;;  %s31_s23 = int_to_ptr.vmem [resolvable:$true] %s30_s23 }
   0x8   :  { %36 = dma.hbm_to_vmem [thread:$0]  %s29_s19, 2048, %s31_s23, [#allocation7], %s273_s20, %s273_s20, %s274_s21  }
   0x9   :  { %266 = dma.done.wait [#allocation4], 256  }
   0xa   :  { %267 = vsyncadd [#allocation4], 4294967040 }
   0xb   :  { %268 = dma.done.wait [#allocation7], 2048  }
   0xc   :  { %269 = vsyncadd [#allocation7], 4294965248  ;;  %v51_v0 = vld [vmem:[#allocation3] sm:$0xff]  ;;  %v52_v1 = vld [vmem:[#allocation3 + $0x8] sm:$0xff]  ;;  %s276_s24 = smov [#allocation8]   ;;  %s154_s28 = sshll.u32 %s331_s3, 4  ;;  %s155_s28 = int_to_ptr.hbm [resolvable:$true] %s154_s28 }
   0xd   :  { %53 = vadd.xlane.f32.xlu0 %v51_v0  ;;  %v118_v2 = vld [vmem:[#allocation6 + $0x78] sm:$0xff]  ;;  %v117_v3 = vld [vmem:[#allocation6 + $0x70] sm:$0xff]  ;;  %v116_v4 = vld [vmem:[#allocation6 + $0x68] sm:$0xff]  ;;  %s152_s25 = sshll.u32 %s276_s24, 4  ;;  %s153_s25 = int_to_ptr.vmem [resolvable:$true] %s152_s25 }
   0xe   :  { %123 = vmatpush.msra.mxu0 %v118_v2  ;;  %168 = vmatpush.msra.mxu1 %v118_v2  ;;  %v115_v13 = vld [vmem:[#allocation6 + $0x60] sm:$0xff]  ;;  %v114_v14 = vld [vmem:[#allocation6 + $0x58] sm:$0xff]  ;;  %v113_v15 = vld [vmem:[#allocation6 + $0x50] sm:$0xff] }
   0xf   :  { %v112_v16 = vld [vmem:[#allocation6 + $0x48] sm:$0xff]  ;;  %v111_v17 = vld [vmem:[#allocation6 + $0x40] sm:$0xff]  ;;  %v110_v18 = vld [vmem:[#allocation6 + $0x38] sm:$0xff] }
  0x10   :  { %124 = vmatpush.msra.mxu0 %v117_v3  ;;  %169 = vmatpush.msra.mxu1 %v117_v3  ;;  %v109_v19 = vld [vmem:[#allocation6 + $0x30] sm:$0xff]  ;;  %v108_v20 = vld [vmem:[#allocation6 + $0x28] sm:$0xff]  ;;  %v107_v21 = vld [vmem:[#allocation6 + $0x20] sm:$0xff] }
  0x11   :  { %v106_v22 = vld [vmem:[#allocation6 + $0x18] sm:$0xff]  ;;  %v105_v23 = vld [vmem:[#allocation6 + $0x10] sm:$0xff]  ;;  %v104_v24 = vld [vmem:[#allocation6 + $0x8] sm:$0xff] }
  0x12   :  { %125 = vmatpush.msra.mxu0 %v116_v4  ;;  %170 = vmatpush.msra.mxu1 %v116_v4  ;;  %v103_v25 = vld [vmem:[#allocation6] sm:$0xff]  ;;  %v189_v54 = vld [vmem:[%s330_s2] ss:$0 sm:$0xff] }
  0x14   :  { %126 = vmatpush.msra.mxu0 %v115_v13  ;;  %171 = vmatpush.msra.mxu1 %v115_v13 }
  0x15   :  { %55 = vadd.xlane.f32.xlu0 %v52_v1 }
  0x16   :  { %127 = vmatpush.msra.mxu0 %v114_v14  ;;  %172 = vmatpush.msra.mxu1 %v114_v14 }
  0x18   :  { %128 = vmatpush.msra.mxu0 %v113_v15  ;;  %173 = vmatpush.msra.mxu1 %v113_v15 }
  0x1a   :  { %129 = vmatpush.msra.mxu0 %v112_v16  ;;  %174 = vmatpush.msra.mxu1 %v112_v16 }
  0x1c   :  { %130 = vmatpush.msra.mxu0 %v111_v17  ;;  %175 = vmatpush.msra.mxu1 %v111_v17 }
  0x1e   :  { %131 = vmatpush.msra.mxu0 %v110_v18  ;;  %176 = vmatpush.msra.mxu1 %v110_v18 }
  0x20   :  { %132 = vmatpush.msra.mxu0 %v109_v19  ;;  %177 = vmatpush.msra.mxu1 %v109_v19 }
  0x22   :  { %133 = vmatpush.msra.mxu0 %v108_v20  ;;  %178 = vmatpush.msra.mxu1 %v108_v20 }
  0x24   :  { %134 = vmatpush.msra.mxu0 %v107_v21  ;;  %179 = vmatpush.msra.mxu1 %v107_v21 }
  0x26   :  { %135 = vmatpush.msra.mxu0 %v106_v22  ;;  %180 = vmatpush.msra.mxu1 %v106_v22 }
  0x28   :  { %136 = vmatpush.msra.mxu0 %v105_v23  ;;  %181 = vmatpush.msra.mxu1 %v105_v23 }
  0x2a   :  { %137 = vmatpush.msra.mxu0 %v104_v24  ;;  %182 = vmatpush.msra.mxu1 %v104_v24 }
  0x2c   :  { %138 = vmatpush.msra.mxu0 %v103_v25  ;;  %183 = vmatpush.msra.mxu1 %v103_v25 }
  0x80   :  { %v54_v5 = vpop.xlane.xlu0 %53 }
  0x81   :  { %v57_v6 = vmul.f32 0.03125, %v54_v5 }
  0x83   :  { %v309_v7 = vsub.f32 %v51_v0, %v57_v6  ;;  %v67_v26 = vmul.f32 %v57_v6, %v57_v6 }
  0x85   :  { %v61_v8 = vmul.f32 %v309_v7, %v309_v7  ;;  %v69_v27 = vmul.f32 96.0, %v67_v26 }
  0x87   :  { %63 = vadd.xlane.f32.xlu1 %v61_v8 }
  0x88   :  { %v56_v9 = vpop.xlane.xlu0 %55 }
  0x89   :  { %v58_v10 = vmul.f32 0.03125, %v56_v9 }
  0x8b   :  { %v313_v11 = vsub.f32 %v52_v1, %v58_v10  ;;  %v68_v30 = vmul.f32 %v58_v10, %v58_v10 }
  0x8d   :  { %v62_v12 = vmul.f32 %v313_v11, %v313_v11  ;;  %v70_v33 = vmul.f32 96.0, %v68_v30 }
  0x8f   :  { %65 = vadd.xlane.f32.xlu1 %v62_v12 }
  0xfa   :  { %v64_v28 = vpop.xlane.xlu1 %63 }
  0xfb   :  { %v71_v29 = vsub.f32 %v64_v28, %v69_v27 }
  0xfd   :  { %v73_v31 = vmul.f32 0.03125, %v71_v29 }
  0xff   :  { %v75_v32 = vadd.f32 1e-05, %v73_v31 }
 0x101   :  { %190 = vrsqrt.f32 %v75_v32  ;;  %vm83_vm1 = vweird.f32 %v75_v32 }
 0x102   :  { %v66_v34 = vpop.xlane.xlu1 %65 }
 0x103   :  { %v72_v35 = vsub.f32 %v66_v34, %v70_v33 }
 0x105   :  { %v74_v36 = vmul.f32 0.03125, %v72_v35 }
 0x107   :  { %v191_v37 = vpop.eup %190  ;;  %v76_v38 = vadd.f32 1e-05, %v74_v36 }
 0x108   :  { %v78_v39 = vmul.f32 %v191_v37, %v75_v32  ;;  %vm84_vm0 = vweird.f32 %v191_v37 }
 0x109   :  { %192 = vrsqrt.f32 %v76_v38  ;;  %vm85_vm2 = vmor %vm83_vm1, %vm84_vm0  ;;  %vm93_vm4 = vweird.f32 %v76_v38 }
 0x10a   :  { %v79_v40 = vmul.f32 %v191_v37, %v78_v39 }
 0x10c   :  { %v80_v41 = vmul.f32 0.5, %v79_v40 }
 0x10e   :  { %v81_v42 = vsub.f32 1.5, %v80_v41 }
 0x10f   :  { %v193_v43 = vpop.eup %192 }
 0x110   :  { %v88_v44 = vmul.f32 %v193_v43, %v76_v38  ;;  %v82_v45 = vmul.f32 %v191_v37, %v81_v42  ;;  %vm94_vm3 = vweird.f32 %v193_v43 }
 0x111   :  { %vm95_vm5 = vmor %vm93_vm4, %vm94_vm3 }
 0x112   :  { %v89_v46 = vmul.f32 %v193_v43, %v88_v44  ;;  %v86_v47 = vsel %vm85_vm2, %v191_v37, %v82_v45 }
 0x113   :  { %v97_v48 = vmul.f32 %v86_v47, %v309_v7 }
 0x114   :  { %v90_v49 = vmul.f32 0.5, %v89_v46 }
 0x115   :  { %139 = vmatmul.f32.vlgmr.msra.gmra.mxu0 %v97_v48 }
 0x116   :  { %v91_v50 = vsub.f32 1.5, %v90_v49 }
 0x118   :  { %v92_v51 = vmul.f32 %v193_v43, %v91_v50 }
 0x11a   :  { %v96_v52 = vsel %vm95_vm5, %v193_v43, %v92_v51 }
 0x11b   :  { %v98_v53 = vmul.f32 %v96_v52, %v313_v11 }
 0x11d   :  { %142 = vmatmul.f32.vlgmr.msra.gmra.mxu1 %v98_v53 }
 0x192   :  { %v140_v55 = vpop.f32.mrf.mxu0 }
 0x193   :  { %v141_v56 = vadd.f32 %v189_v54, %v140_v55 }
 0x195   :  { %146 = vst [vmem:[#allocation8] sm:$0xff] %v141_v56 }
 0x19a   :  { %v143_v57 = vpop.f32.mrf.mxu1 }
 0x19b   :  { %v144_v58 = vadd.f32 %v189_v54, %v143_v57 }
 0x19d   :  { %147 = vst [vmem:[#allocation8 + $0x8] sm:$0xff] %v144_v58 }
 0x19e   :  { %160 = dma.vmem_to_hbm [thread:$0]  %s153_s25, 256, %s155_s28, [#allocation5], %s273_s20, %s273_s20, %s274_s21  }
 0x19f   :  { %270 = dma.done.wait [#allocation5], 256  }
 0x1a0   :  { %271 = vsyncadd [#allocation5], 4294967040 }
 0x1a1   :  { %165 = vsyncpa [#allocation4], 1 }
 0x1a2   :  { %166 = vsyncpa [#allocation7], 1 }
 0x1a3   :  { %167 = vsyncpa [#allocation5], 1 }

</bundles_post_ra>
